<compile_context>
chip_gen: v7x
topology: tpu7x:2x2x1
jax: 0.10.0
libtpu: 0.0.40
codegen_flags: <defaults>
</compile_context>

<pallas_src>
import functools

import jax
import jax.numpy as jnp
from jax.experimental import pallas as pl
from jax.experimental.pallas import tpu as pltpu


def policy_net_kernel(x_ref, w1_ref, b1_ref, w2_ref, b2_ref, o_ref,
                      *, action_bound):
    # fc1: (tb, S)f32 @ (S, H)f32 -> (tb, H)f32 on the MXU.
    h = jnp.dot(x_ref[...], w1_ref[...], preferred_element_type=jnp.float32)
    h = jnp.maximum(h + b1_ref[...], 0.0)                  # bias + ReLU (VPU)
    # fc2: (tb, H)f32 @ (H, A)f32 -> (tb, A)f32 on the MXU.
    y = jnp.dot(h, w2_ref[...], preferred_element_type=jnp.float32)
    y = jnp.tanh(y + b2_ref[...]) * action_bound            # bias + tanh (EUP) + scale
    o_ref[...] = y.astype(o_ref.dtype)


_TB_CANDIDATES = (32768, 16384, 8192, 4096, 2048, 1024, 512, 256, 128)


def _pick_batch_tile(batch):
    """Largest lane-friendly batch tile dividing `batch`.

    Preference order:
      1. even number of grid steps (>=2)  -> balanced across v7x's 2 TCs
      2. at least 2 grid steps            -> both TCs get work
      3. any divisor from the candidate list
      4. the whole batch (block dim == array dim is always legal)
    """
    for tb in _TB_CANDIDATES:
        if batch % tb == 0 and (batch // tb) >= 2 and (batch // tb) % 2 == 0:
            return tb
    for tb in _TB_CANDIDATES:
        if batch % tb == 0 and (batch // tb) >= 2:
            return tb
    for tb in _TB_CANDIDATES:
        if batch % tb == 0:
            return tb
    return batch


def policy_net_forward(x, w1, b1, w2, b2, action_bound):
    """PolicyNet forward pass.

    x : (B, n_states) float32
    w1: (n_hiddens, n_states), b1: (n_hiddens,)       (PyTorch nn.Linear layout)
    w2: (n_actions, n_hiddens), b2: (n_actions,)
    Returns (B, n_actions) float32.
    """
    B_orig, n_states = x.shape
    n_hiddens = w1.shape[0]
    n_actions = w2.shape[0]

    # Pad batch to a multiple of 128 so every tile is lane/sublane friendly.
    x = jnp.asarray(x, jnp.float32)
    pad = (-B_orig) % 128
    if pad:
        x = jnp.concatenate(
            [x, jnp.zeros((pad, n_states), jnp.float32)], axis=0)
    B = x.shape[0]

    tb = _pick_batch_tile(B)
    grid = (B // tb,)

    # Tiny one-time weight layout plumbing (KB-sized arrays): transpose to the
    # (in, out) orientation so the kernel does plain row-major matmuls.
    w1_t = jnp.asarray(w1, jnp.float32).T            # (S, H)
    w2_t = jnp.asarray(w2, jnp.float32).T            # (H, A)
    b1_r = jnp.asarray(b1, jnp.float32).reshape(1, n_hiddens)
    b2_r = jnp.asarray(b2, jnp.float32).reshape(1, n_actions)

    kernel = functools.partial(policy_net_kernel,
                               action_bound=float(action_bound))

    cost = pl.CostEstimate(
        flops=2 * B * (n_states * n_hiddens + n_hiddens * n_actions),
        transcendentals=B * n_actions,
        bytes_accessed=4 * (B * n_states + B * n_actions
                            + w1_t.size + w2_t.size + b1_r.size + b2_r.size),
    )

    out = pl.pallas_call(
        kernel,
        out_shape=jax.ShapeDtypeStruct((B, n_actions), jnp.float32),
        grid=grid,
        in_specs=[
            pl.BlockSpec((tb, n_states), lambda i: (i, 0)),          # x tile (contiguous)
            pl.BlockSpec((n_states, n_hiddens), lambda i: (0, 0)),   # W1^T resident
            pl.BlockSpec((1, n_hiddens), lambda i: (0, 0)),          # b1 resident
            pl.BlockSpec((n_hiddens, n_actions), lambda i: (0, 0)),  # W2^T resident
            pl.BlockSpec((1, n_actions), lambda i: (0, 0)),          # b2 resident
        ],
        out_specs=pl.BlockSpec((tb, n_actions), lambda i: (i, 0)),   # natural-layout out
        compiler_params=pltpu.CompilerParams(
            dimension_semantics=("parallel",)),
        cost_estimate=cost,
    )(x, w1_t, b1_r, w2_t, b2_r)

    return out[:B_orig]


def init_params(key, n_states, n_hiddens, n_actions):
    """Deterministic synthetic init, PyTorch nn.Linear default (uniform)."""
    k1, k2, k3, k4 = jax.random.split(key, 4)
    lim1 = 1.0 / float(n_states) ** 0.5
    lim2 = 1.0 / float(n_hiddens) ** 0.5
    w1 = jax.random.uniform(k1, (n_hiddens, n_states), jnp.float32, -lim1, lim1)
    b1 = jax.random.uniform(k2, (n_hiddens,), jnp.float32, -lim1, lim1)
    w2 = jax.random.uniform(k3, (n_actions, n_hiddens), jnp.float32, -lim2, lim2)
    b2 = jax.random.uniform(k4, (n_actions,), jnp.float32, -lim2, lim2)
    return w1, b1, w2, b2


if __name__ == "__main__":
    # Shapes consistent with PolicyNet(n_states, n_hiddens, n_actions, bound);
    # batch=256 -> tb=128, grid=(2,) (even -> balanced on v7x's 2 TCs).
    batch, n_states, n_hiddens, n_actions = 256, 16, 32, 8
    action_bound = 2.0

    key = jax.random.PRNGKey(0)
    kx, kp = jax.random.split(key)
    x = jax.random.normal(kx, (batch, n_states), jnp.float32)
    w1, b1, w2, b2 = init_params(kp, n_states, n_hiddens, n_actions)

    out = policy_net_forward(x, w1, b1, w2, b2, action_bound)
    out = jax.block_until_ready(out)

    # Pure-JAX f32 reference of the PyTorch forward semantics.
    ref = jnp.tanh(jnp.maximum(x @ w1.T + b1, 0.0) @ w2.T + b2) * action_bound
    assert out.shape == (batch, n_actions)
    assert jnp.allclose(out, ref, atol=1e-2, rtol=1e-2), float(
        jnp.max(jnp.abs(out - ref)))

    print("KERNEL_OK")
</pallas_src>

<mosaic_0001>
module attributes {stable_mosaic.version = 11 : i64} {
  func.func @policy_net_kernel(%arg0: i32, %arg1: memref<128x16xf32, #tpu.memory_space<vmem>>, %arg2: memref<16x32xf32, #tpu.memory_space<vmem>>, %arg3: memref<1x32xf32, #tpu.memory_space<vmem>>, %arg4: memref<32x8xf32, #tpu.memory_space<vmem>>, %arg5: memref<1x8xf32, #tpu.memory_space<vmem>>, %arg6: memref<128x8xf32, #tpu.memory_space<vmem>>) attributes {dimension_semantics = [#tpu.dimension_semantics<parallel>], iteration_bounds = array<i64: 2>, scalar_prefetch = 0 : i64, scratch_operands = 0 : i64, tpu.core_type = #tpu.core_type<tc>, window_params = [{transform_indices = @transform_0, window_bounds = array<i64: 128, 16>}, {pipeline_mode = #tpu.pipeline_mode<synchronous>, transform_indices = @transform_1, window_bounds = array<i64: 16, 32>}, {pipeline_mode = #tpu.pipeline_mode<synchronous>, transform_indices = @transform_2, window_bounds = array<i64: 1, 32>}, {pipeline_mode = #tpu.pipeline_mode<synchronous>, transform_indices = @transform_3, window_bounds = array<i64: 32, 8>}, {pipeline_mode = #tpu.pipeline_mode<synchronous>, transform_indices = @transform_4, window_bounds = array<i64: 1, 8>}, {transform_indices = @transform_5, window_bounds = array<i64: 128, 8>}]} {
    %c0 = arith.constant 0 : index
    %c0_0 = arith.constant 0 : index
    %0 = vector.load %arg1[%c0, %c0_0] : memref<128x16xf32, #tpu.memory_space<vmem>>, vector<128x16xf32>
    %c0_1 = arith.constant 0 : index
    %c0_2 = arith.constant 0 : index
    %1 = vector.load %arg2[%c0_1, %c0_2] : memref<16x32xf32, #tpu.memory_space<vmem>>, vector<16x32xf32>
    %cst = arith.constant dense<0.000000e+00> : vector<128x32xf32>
    %2 = tpu.matmul %0, %1, %cst {dimension_numbers = #tpu.dot_dimension_numbers<[1], [0], [0], [1], [0, 0, 1, 1], [], []>} : vector<128x16xf32>, vector<16x32xf32>, vector<128x32xf32> -> vector<128x32xf32>
    %c0_3 = arith.constant 0 : index
    %c0_4 = arith.constant 0 : index
    %3 = vector.load %arg3[%c0_3, %c0_4] : memref<1x32xf32, #tpu.memory_space<vmem>>, vector<1x32xf32>
    %4 = vector.broadcast %3 : vector<1x32xf32> to vector<128x32xf32>
    %5 = arith.addf %2, %4 : vector<128x32xf32>
    %cst_5 = arith.constant 0.000000e+00 : f32
    %6 = vector.broadcast %cst_5 : f32 to vector<128x32xf32>
    %7 = arith.maximumf %5, %6 : vector<128x32xf32>
    %c0_6 = arith.constant 0 : index
    %c0_7 = arith.constant 0 : index
    %8 = vector.load %arg4[%c0_6, %c0_7] : memref<32x8xf32, #tpu.memory_space<vmem>>, vector<32x8xf32>
    %cst_8 = arith.constant dense<0.000000e+00> : vector<128x8xf32>
    %9 = tpu.matmul %7, %8, %cst_8 {dimension_numbers = #tpu.dot_dimension_numbers<[1], [0], [0], [1], [0, 0, 1, 1], [], []>} : vector<128x32xf32>, vector<32x8xf32>, vector<128x8xf32> -> vector<128x8xf32>
    %c0_9 = arith.constant 0 : index
    %c0_10 = arith.constant 0 : index
    %10 = vector.load %arg5[%c0_9, %c0_10] : memref<1x8xf32, #tpu.memory_space<vmem>>, vector<1x8xf32>
    %11 = vector.broadcast %10 : vector<1x8xf32> to vector<128x8xf32>
    %12 = arith.addf %9, %11 : vector<128x8xf32>
    %13 = math.tanh %12 : vector<128x8xf32>
    %cst_11 = arith.constant 2.000000e+00 : f32
    %14 = vector.broadcast %cst_11 : f32 to vector<128x8xf32>
    %15 = arith.mulf %13, %14 : vector<128x8xf32>
    %c0_12 = arith.constant 0 : index
    %c0_13 = arith.constant 0 : index
    %16 = vector.load %arg6[%c0_12, %c0_13] : memref<128x8xf32, #tpu.memory_space<vmem>>, vector<128x8xf32>
    tpu.vector_store %arg6[%c0_12, %c0_13], %15 {strides = array<i32>} : memref<128x8xf32, #tpu.memory_space<vmem>>, vector<128x8xf32>,
    return
  }
  func.func @transform_0(%arg0: i32) -> (i32, i32) {
    %c0_i32 = arith.constant 0 : i32
    %c0_i32_0 = arith.constant 0 : i32
    return %arg0, %c0_i32 : i32, i32
  }
  func.func @transform_1(%arg0: i32) -> (i32, i32) {
    %c0_i32 = arith.constant 0 : i32
    %c0_i32_0 = arith.constant 0 : i32
    %c0_i32_1 = arith.constant 0 : i32
    return %c0_i32, %c0_i32_0 : i32, i32
  }
  func.func @transform_2(%arg0: i32) -> (i32, i32) {
    %c0_i32 = arith.constant 0 : i32
    %c0_i32_0 = arith.constant 0 : i32
    %c0_i32_1 = arith.constant 0 : i32
    return %c0_i32, %c0_i32_0 : i32, i32
  }
  func.func @transform_3(%arg0: i32) -> (i32, i32) {
    %c0_i32 = arith.constant 0 : i32
    %c0_i32_0 = arith.constant 0 : i32
    %c0_i32_1 = arith.constant 0 : i32
    return %c0_i32, %c0_i32_0 : i32, i32
  }
  func.func @transform_4(%arg0: i32) -> (i32, i32) {
    %c0_i32 = arith.constant 0 : i32
    %c0_i32_0 = arith.constant 0 : i32
    %c0_i32_1 = arith.constant 0 : i32
    return %c0_i32, %c0_i32_0 : i32, i32
  }
  func.func @transform_5(%arg0: i32) -> (i32, i32) {
    %c0_i32 = arith.constant 0 : i32
    %c0_i32_0 = arith.constant 0 : i32
    return %arg0, %c0_i32 : i32, i32
  }
}

</mosaic_0001>

<bundles_post_ra>
// kernel: tpu_custom_call.1
= control target key start
LH: loop header
LB: loop body
LE: loop exit
PB: predicated region body
PF: predicated region fallthrough
CT: control target
= control target key end

     0   :  { %s1006_s18 = smov 0   ;;  %s1156_s0 = inlined_call_operand.vmem [shape: f32[256,16], index: 0, kind: input, shape index: {}]   ;;  %s1157_s1 = inlined_call_operand.vmem [shape: f32[16,32], index: 1, kind: input, shape index: {}]   ;;  %s1158_s2 = inlined_call_operand.vmem [shape: f32[1,32], index: 2, kind: input, shape index: {}]   ;;  %s1159_s3 = inlined_call_operand.vmem [shape: f32[32,8], index: 3, kind: input, shape index: {}]   ;;  %s1160_s4 = inlined_call_operand.vmem [shape: f32[1,8], index: 4, kind: input, shape index: {}]   ;;  %s1161_s5 = inlined_call_operand.vmem [shape: f32[256,8], index: 5, kind: output, shape index: {}]  }
   0x1 LB: > { %s773_s19 = sadd.s32 4294967295, %s974_s18   ;;  %p777_p0 = scmp.ge.s32.totalorder %s974_s18, 1  ;;  %s974_s18 = sphi %s1006_s18, %s15_s18  }
   0x2   : > { %p188_p1 = scmp.lt.s32.totalorder %s974_s18, 3 }
   0x4   : > { %p189_p2 = pnand %p777_p0, %p188_p1 }
   0x5   : > { %v244_v0 = vld [vmem:[%s1157_s1] sm:$0xff] (!%p189_p2)  ;;  %v245_v1 = vld [vmem:[%s1157_s1 + $0x8] sm:$0xff] (!%p189_p2)  ;;  %s778_s24 = sshll.u32 (!%p189_p2), %s773_s19, 4  ;;  %vm253_vm0 = vcmask (!%p189_p2), 130048   ;;  %v465_v22 = vld [vmem:[%s1159_s3 + $0x10] sm:$0xff] (!%p189_p2)  ;;  %vm474_vm1 = vcmask (!%p189_p2), 261120  }
   0x6   : > { %192 = sbr.rel (%p189_p2) target bundleno = 493 (0x1ed), region = 40  ;;  %v463_v2 = vld [vmem:[%s1159_s3] sm:$0xff] (!%p189_p2)  ;;  %v916_v3 = vpack.c.bf16 (!%p189_p2), %v245_v1, %v244_v0  ;;  %p217_p3 = scmp.lt.s32.totalorder (!%p189_p2), %s778_s24, 31  ;;  %v464_v4 = vld [vmem:[%s1159_s3 + $0x8] sm:$0xff] (!%p189_p2)  ;;  %v466_v23 = vld [vmem:[%s1159_s3 + $0x18] sm:$0xff] (!%p189_p2)  ;;  %vm700_vm2 = vcmask (!%p189_p2), 64512  }
   0x7   : > { %v920_v5 = vpack.c.bf16 (!%p189_p2), %v464_v4, %v463_v2  ;;  %v924_v24 = vpack.c.bf16 (!%p189_p2), %v466_v23, %v465_v22  ;;  %v782_v25 = vld [vmem:[%s1158_s2] ss:$0 sm:$0xff] (!%p189_p2) }
   0x8   : > { %917 = vmatprep.subr.bf16.mxu0 (!%p189_p2), %v916_v3 }
   0x9   : > { %919 = vmatpush3.bf16.msra.mxu0 (!%p189_p2), %v916_v3  ;;  %921 = vmatprep.subr.bf16.mxu1 (!%p189_p2), %v920_v5 }
   0xa   : > { %923 = vmatpush3.bf16.msra.mxu1 (!%p189_p2), %v920_v5 }
   0xb   : > { %925 = vmatprep.subr.bf16.mxu1 (!%p189_p2), %v924_v24 }
   0xd   : > { %s1163_s24 = smov (!%p217_p3, %s778_s24), 31 }
   0xe   : > { %s779_s29 = sshll.u32 %s1163_s24, 3  ;;  %927 = vmatpush3.bf16.msra.mxu1 %v924_v24 }
   0xf   : > { %s1034_s7 = scalar_lea.vmem %s1156_s0, %s779_s29  ;;  %s1109_s19 = scalar_lea.vmem %s1161_s5, %s779_s29 }
  0x10   : > { %v228_v6 = vld [vmem:[%s1034_s7] sm:$0xff]  ;;  %v229_v7 = vld [vmem:[%s1034_s7 + $0x8] sm:$0xff]  ;;  %v230_v8 = vld [vmem:[%s1034_s7 + $0x10] sm:$0xff] }
  0x11   : > { %860 = vmatprep.mubr.msk.f32.mxu0 %vm253_vm0, %v228_v6  ;;  %v231_v9 = vld [vmem:[%s1034_s7 + $0x18] sm:$0xff]  ;;  %v232_v10 = vld [vmem:[%s1034_s7 + $0x20] sm:$0xff]  ;;  %v233_v11 = vld [vmem:[%s1034_s7 + $0x28] sm:$0xff] }
  0x12   : > { %861 = vmatmul.mubr.msk.f32.vlgmr.msra.gmra.mrb[0].mxu0 %vm253_vm0, %v229_v7  ;;  %v234_v12 = vld [vmem:[%s1034_s7 + $0x30] sm:$0xff]  ;;  %v235_v13 = vld [vmem:[%s1034_s7 + $0x38] sm:$0xff]  ;;  %v236_v14 = vld [vmem:[%s1034_s7 + $0x40] sm:$0xff] }
  0x13   : > { %863 = vmatprep.mubr.msk.f32.mxu0 %vm253_vm0, %v230_v8  ;;  %v237_v15 = vld [vmem:[%s1034_s7 + $0x48] sm:$0xff]  ;;  %v238_v16 = vld [vmem:[%s1034_s7 + $0x50] sm:$0xff]  ;;  %v239_v17 = vld [vmem:[%s1034_s7 + $0x58] sm:$0xff] }
  0x14   : > { %v240_v18 = vld [vmem:[%s1034_s7 + $0x60] sm:$0xff]  ;;  %v241_v19 = vld [vmem:[%s1034_s7 + $0x68] sm:$0xff]  ;;  %v242_v20 = vld [vmem:[%s1034_s7 + $0x70] sm:$0xff] }
  0x15   : > { %v243_v21 = vld [vmem:[%s1034_s7 + $0x78] sm:$0xff] }
  0x16   : > { %864 = vmatmul.mubr.msk.f32.gmra.mrb[2].mxu0 %vm253_vm0, %v231_v9 }
  0x17   : > { %866 = vmatprep.mubr.msk.f32.mxu0 %vm253_vm0, %v232_v10  ;;  %v1096_v10 = vld [vmem:[%s1160_s4] ss:$0 sm:$0xff] }
  0x1a   : > { %867 = vmatmul.mubr.msk.f32.gmra.mrb[4].mxu0 %vm253_vm0, %v233_v11 }
  0x1b   : > { %869 = vmatprep.mubr.msk.f32.mxu0 %vm253_vm0, %v234_v12 }
  0x1e   : > { %870 = vmatmul.mubr.msk.f32.gmra.mrb[6].mxu0 %vm253_vm0, %v235_v13 }
  0x1f   : > { %872 = vmatprep.mubr.msk.f32.mxu0 %vm253_vm0, %v236_v14 }
  0x22   : > { %873 = vmatmul.mubr.msk.f32.gmra.mrb[8].mxu0 %vm253_vm0, %v237_v15 }
  0x23   : > { %875 = vmatprep.mubr.msk.f32.mxu0 %vm253_vm0, %v238_v16 }
  0x26   : > { %876 = vmatmul.mubr.msk.f32.gmra.mrb[10].mxu0 %vm253_vm0, %v239_v17 }
  0x27   : > { %878 = vmatprep.mubr.msk.f32.mxu0 %vm253_vm0, %v240_v18 }
  0x2a   : > { %879 = vmatmul.mubr.msk.f32.gmra.mrb[12].mxu0 %vm253_vm0, %v241_v19 }
  0x2b   : > { %881 = vmatprep.mubr.msk.f32.mxu0 %vm253_vm0, %v242_v20 }
  0x2e   : > { %882 = vmatmul.mubr.msk.f32.gmra.mrb[14].mxu0 %vm253_vm0, %v243_v21 }
  0xe5   : > { %v862_v26 = vpop.f32.mrb[0].mxu0 }
  0xe6   : > { %v374_v27 = vadd.f32 %v862_v26, %v782_v25  ;;  %v368_v28 = vpop.f32.mrb[1].mxu0 }
  0xe7   : > { %v369_v29 = vadd.f32 %v782_v25, %v368_v28 }
  0xe8   : > { %v448_v32 = vmax.f32 %v374_v27, 0.0 }
  0xe9   : > { %v447_v30 = vmax.f32 %v369_v29, 0.0  ;;  %v865_v31 = vpop.f32.mrb[2].mxu0 }
  0xea   : > { %v384_v33 = vadd.f32 %v865_v31, %v782_v25  ;;  %v378_v34 = vpop.f32.mrb[3].mxu0 }
  0xeb   : > { %v379_v35 = vadd.f32 %v782_v25, %v378_v34  ;;  %892 = vmatprep.mubr.msk.f32.mxu1 %vm474_vm1, %v447_v30 }
  0xec   : > { %893 = vmatmul.mubr.msk.f32.vlgmr.msra.gmra.mrb[0].mxu1 %vm474_vm1, %v448_v32  ;;  %v450_v38 = vmax.f32 %v384_v33, 0.0 }
  0xed   : > { %v449_v36 = vmax.f32 %v379_v35, 0.0  ;;  %v868_v37 = vpop.f32.mrb[4].mxu0 }
  0xee   : > { %v394_v39 = vadd.f32 %v868_v37, %v782_v25  ;;  %v388_v40 = vpop.f32.mrb[5].mxu0 }
  0xef   : > { %v389_v41 = vadd.f32 %v782_v25, %v388_v40  ;;  %895 = vmatprep.mubr.msk.f32.mxu1 %vm474_vm1, %v449_v36 }
  0xf0   : > { %896 = vmatmul.mubr.msk.f32.gmra.mrb[2].mxu1 %vm474_vm1, %v450_v38  ;;  %v452_v44 = vmax.f32 %v394_v39, 0.0 }
  0xf1   : > { %v451_v42 = vmax.f32 %v389_v41, 0.0  ;;  %v871_v43 = vpop.f32.mrb[6].mxu0 }
  0xf2   : > { %v404_v45 = vadd.f32 %v871_v43, %v782_v25  ;;  %v398_v46 = vpop.f32.mrb[7].mxu0 }
  0xf3   : > { %v399_v47 = vadd.f32 %v782_v25, %v398_v46  ;;  %898 = vmatprep.mubr.msk.f32.mxu1 %vm474_vm1, %v451_v42 }
  0xf4   : > { %899 = vmatmul.mubr.msk.f32.gmra.mrb[4].mxu1 %vm474_vm1, %v452_v44  ;;  %v454_v50 = vmax.f32 %v404_v45, 0.0 }
  0xf5   : > { %v453_v48 = vmax.f32 %v399_v47, 0.0  ;;  %v874_v49 = vpop.f32.mrb[8].mxu0 }
  0xf6   : > { %v414_v51 = vadd.f32 %v874_v49, %v782_v25  ;;  %v408_v52 = vpop.f32.mrb[9].mxu0 }
  0xf7   : > { %v409_v53 = vadd.f32 %v782_v25, %v408_v52  ;;  %901 = vmatprep.mubr.msk.f32.mxu1 %vm474_vm1, %v453_v48 }
  0xf8   : > { %902 = vmatmul.mubr.msk.f32.gmra.mrb[6].mxu1 %vm474_vm1, %v454_v50  ;;  %v456_v56 = vmax.f32 %v414_v51, 0.0 }
  0xf9   : > { %v455_v54 = vmax.f32 %v409_v53, 0.0  ;;  %v877_v55 = vpop.f32.mrb[10].mxu0 }
  0xfa   : > { %v424_v57 = vadd.f32 %v877_v55, %v782_v25  ;;  %v418_v58 = vpop.f32.mrb[11].mxu0 }
  0xfb   : > { %v419_v59 = vadd.f32 %v782_v25, %v418_v58  ;;  %904 = vmatprep.mubr.msk.f32.mxu1 %vm474_vm1, %v455_v54 }
  0xfc   : > { %905 = vmatmul.mubr.msk.f32.gmra.mrb[8].mxu1 %vm474_vm1, %v456_v56  ;;  %v458_v62 = vmax.f32 %v424_v57, 0.0 }
  0xfd   : > { %v457_v60 = vmax.f32 %v419_v59, 0.0  ;;  %v880_v61 = vpop.f32.mrb[12].mxu0 }
  0xfe   : > { %v434_v63 = vadd.f32 %v880_v61, %v782_v25  ;;  %v428_v0 = vpop.f32.mrb[13].mxu0 }
  0xff   : > { %v429_v1 = vadd.f32 %v782_v25, %v428_v0  ;;  %907 = vmatprep.mubr.msk.f32.mxu1 %vm474_vm1, %v457_v60 }
 0x100   : > { %908 = vmatmul.mubr.msk.f32.gmra.mrb[10].mxu1 %vm474_vm1, %v458_v62  ;;  %v460_v4 = vmax.f32 %v434_v63, 0.0 }
 0x101   : > { %v459_v2 = vmax.f32 %v429_v1, 0.0  ;;  %v883_v3 = vpop.f32.mrb[14].mxu0 }
 0x102   : > { %v444_v5 = vadd.f32 %v883_v3, %v782_v25  ;;  %v438_v6 = vpop.f32.mrb[15].mxu0 }
 0x103   : > { %v439_v7 = vadd.f32 %v782_v25, %v438_v6  ;;  %910 = vmatprep.mubr.msk.f32.mxu1 %vm474_vm1, %v459_v2 }
 0x104   : > { %911 = vmatmul.mubr.msk.f32.gmra.mrb[12].mxu1 %vm474_vm1, %v460_v4  ;;  %v462_v9 = vmax.f32 %v444_v5, 0.0 }
 0x105   : > { %v461_v8 = vmax.f32 %v439_v7, 0.0 }
 0x107   : > { %913 = vmatprep.mubr.msk.f32.mxu1 %vm474_vm1, %v461_v8 }
 0x108   : > { %914 = vmatmul.mubr.msk.f32.gmra.mrb[14].mxu1 %vm474_vm1, %v462_v9 }
 0x1bf   : > { %v894_v11 = vpop.f32.mrb[0].mxu1 }
 0x1c0   : > { %v595_v12 = vadd.f32 %v894_v11, %v1096_v10  ;;  %v589_v13 = vpop.f32.mrb[1].mxu1 }
 0x1c1   : > { %v590_v14 = vadd.f32 %v1096_v10, %v589_v13 }
 0x1c2   : > { %936 = vtanh.f32 %v595_v12 }
 0x1c3   : > { %938 = vtanh.f32 %v590_v14  ;;  %v897_v15 = vpop.f32.mrb[2].mxu1 }
 0x1c4   : > { %v605_v16 = vadd.f32 %v897_v15, %v1096_v10  ;;  %v599_v17 = vpop.f32.mrb[3].mxu1 }
 0x1c5   : > { %v600_v18 = vadd.f32 %v1096_v10, %v599_v17 }
 0x1c6   : > { %940 = vtanh.f32 %v605_v16 }
 0x1c7   : > { %942 = vtanh.f32 %v600_v18  ;;  %v900_v19 = vpop.f32.mrb[4].mxu1 }
 0x1c8   : > { %v615_v20 = vadd.f32 %v900_v19, %v1096_v10  ;;  %v609_v21 = vpop.f32.mrb[5].mxu1 }
 0x1c9   : > { %v610_v22 = vadd.f32 %v1096_v10, %v609_v21 }
 0x1ca   : > { %944 = vtanh.f32 %v615_v20 }
 0x1cb   : > { %946 = vtanh.f32 %v610_v22  ;;  %v903_v23 = vpop.f32.mrb[6].mxu1 }
 0x1cc   : > { %v937_v24 = vpop.eup %936  ;;  %v625_v25 = vadd.f32 %v903_v23, %v1096_v10  ;;  %v619_v26 = vpop.f32.mrb[7].mxu1 }
 0x1cd   : > { %v939_v27 = vpop.eup %938  ;;  %v685_v28 = vmul.f32 2.0, %v937_v24  ;;  %v620_v29 = vadd.f32 %v1096_v10, %v619_v26 }
 0x1ce   : > { %v684_v30 = vmul.f32 2.0, %v939_v27  ;;  %948 = vtanh.f32 %v625_v25 }
 0x1cf   : > { %702 = vst.msk [vmem:[%s1109_s19 + $0x8] sm:$0xff] %vm700_vm2, %v685_v28  ;;  %950 = vtanh.f32 %v620_v29  ;;  %v906_v31 = vpop.f32.mrb[8].mxu1 }
 0x1d0   : > { %v941_v32 = vpop.eup %940  ;;  %701 = vst.msk [vmem:[%s1109_s19] sm:$0xff] %vm700_vm2, %v684_v30  ;;  %v635_v33 = vadd.f32 %v906_v31, %v1096_v10  ;;  %v629_v34 = vpop.f32.mrb[9].mxu1 }
 0x1d1   : > { %v943_v35 = vpop.eup %942  ;;  %v687_v36 = vmul.f32 2.0, %v941_v32  ;;  %v630_v37 = vadd.f32 %v1096_v10, %v629_v34 }
 0x1d2   : > { %v686_v38 = vmul.f32 2.0, %v943_v35  ;;  %952 = vtanh.f32 %v635_v33 }
 0x1d3   : > { %704 = vst.msk [vmem:[%s1109_s19 + $0x18] sm:$0xff] %vm700_vm2, %v687_v36  ;;  %954 = vtanh.f32 %v630_v37  ;;  %v909_v39 = vpop.f32.mrb[10].mxu1 }
 0x1d4   : > { %v945_v40 = vpop.eup %944  ;;  %703 = vst.msk [vmem:[%s1109_s19 + $0x10] sm:$0xff] %vm700_vm2, %v686_v38  ;;  %v645_v41 = vadd.f32 %v909_v39, %v1096_v10  ;;  %v639_v42 = vpop.f32.mrb[11].mxu1 }
 0x1d5   : > { %v947_v43 = vpop.eup %946  ;;  %v689_v44 = vmul.f32 2.0, %v945_v40  ;;  %v640_v45 = vadd.f32 %v1096_v10, %v639_v42 }
 0x1d6   : > { %v688_v46 = vmul.f32 2.0, %v947_v43  ;;  %956 = vtanh.f32 %v645_v41 }
 0x1d7   : > { %706 = vst.msk [vmem:[%s1109_s19 + $0x28] sm:$0xff] %vm700_vm2, %v689_v44  ;;  %958 = vtanh.f32 %v640_v45  ;;  %v912_v47 = vpop.f32.mrb[12].mxu1 }
 0x1d8   : > { %v949_v48 = vpop.eup %948  ;;  %705 = vst.msk [vmem:[%s1109_s19 + $0x20] sm:$0xff] %vm700_vm2, %v688_v46  ;;  %v655_v49 = vadd.f32 %v912_v47, %v1096_v10  ;;  %v649_v50 = vpop.f32.mrb[13].mxu1 }
 0x1d9   : > { %v951_v51 = vpop.eup %950  ;;  %v691_v52 = vmul.f32 2.0, %v949_v48  ;;  %v650_v53 = vadd.f32 %v1096_v10, %v649_v50 }
 0x1da   : > { %v690_v54 = vmul.f32 2.0, %v951_v51  ;;  %960 = vtanh.f32 %v655_v49 }
 0x1db   : > { %708 = vst.msk [vmem:[%s1109_s19 + $0x38] sm:$0xff] %vm700_vm2, %v691_v52  ;;  %962 = vtanh.f32 %v650_v53  ;;  %v915_v55 = vpop.f32.mrb[14].mxu1 }
 0x1dc   : > { %v953_v56 = vpop.eup %952  ;;  %707 = vst.msk [vmem:[%s1109_s19 + $0x30] sm:$0xff] %vm700_vm2, %v690_v54  ;;  %v665_v57 = vadd.f32 %v915_v55, %v1096_v10  ;;  %v659_v58 = vpop.f32.mrb[15].mxu1 }
 0x1dd   : > { %v955_v59 = vpop.eup %954  ;;  %v693_v60 = vmul.f32 2.0, %v953_v56  ;;  %v660_v61 = vadd.f32 %v1096_v10, %v659_v58 }
 0x1de   : > { %v692_v62 = vmul.f32 2.0, %v955_v59  ;;  %964 = vtanh.f32 %v665_v57 }
 0x1df   : > { %710 = vst.msk [vmem:[%s1109_s19 + $0x48] sm:$0xff] %vm700_vm2, %v693_v60  ;;  %966 = vtanh.f32 %v660_v61 }
 0x1e0   : > { %v957_v63 = vpop.eup %956  ;;  %709 = vst.msk [vmem:[%s1109_s19 + $0x40] sm:$0xff] %vm700_vm2, %v692_v62 }
 0x1e1   : > { %v959_v0 = vpop.eup %958  ;;  %v695_v1 = vmul.f32 2.0, %v957_v63 }
 0x1e2   : > { %v694_v2 = vmul.f32 2.0, %v959_v0 }
 0x1e3   : > { %712 = vst.msk [vmem:[%s1109_s19 + $0x58] sm:$0xff] %vm700_vm2, %v695_v1 }
 0x1e4   : > { %v961_v3 = vpop.eup %960  ;;  %711 = vst.msk [vmem:[%s1109_s19 + $0x50] sm:$0xff] %vm700_vm2, %v694_v2 }
 0x1e5   : > { %v963_v4 = vpop.eup %962  ;;  %v697_v5 = vmul.f32 2.0, %v961_v3 }
 0x1e6   : > { %v696_v6 = vmul.f32 2.0, %v963_v4 }
 0x1e7   : > { %714 = vst.msk [vmem:[%s1109_s19 + $0x68] sm:$0xff] %vm700_vm2, %v697_v5 }
 0x1e8   : > { %v965_v7 = vpop.eup %964  ;;  %713 = vst.msk [vmem:[%s1109_s19 + $0x60] sm:$0xff] %vm700_vm2, %v696_v6 }
 0x1e9   : > { %v967_v8 = vpop.eup %966  ;;  %v699_v9 = vmul.f32 2.0, %v965_v7 }
 0x1ea   : > { %v698_v10 = vmul.f32 2.0, %v967_v8 }
 0x1eb   : > { %716 = vst.msk [vmem:[%s1109_s19 + $0x78] sm:$0xff] %vm700_vm2, %v699_v9 }
 0x1ec   : > { %715 = vst.msk [vmem:[%s1109_s19 + $0x70] sm:$0xff] %vm700_vm2, %v698_v10 }
 0x1ed PF: > { %s15_s18 = sadd.s32 1, %s974_s18  }
 0x1ee   : > { %p12_p4 = scmp.ge.s32.totalorder %s15_s18, 4  }
 0x1f0   :  { %14 = sbr.rel (!%p12_p4) target bundleno = 1 (0x1), region = 70 }

</bundles_post_ra>
